<compile_context>
chip_gen: v7x
topology: tpu7x:2x2x1
jax: 0.10.0
libtpu: 0.0.40
codegen_flags: <defaults>
</compile_context>

<pallas_src>
import functools

import jax
import jax.numpy as jnp
from jax.experimental import pallas as pl
from jax.experimental.pallas import tpu as pltpu


def _round_up(x: int, m: int) -> int:
    return ((x + m - 1) // m) * m


# --------------------------------------------------------------------------
# Kernel
# --------------------------------------------------------------------------
def _rnn_cell_kernel(h_ref, x_ref, w_hh_ref, w_hx_ref, b1_ref, w2_ref, b2_ref,
                     ht_ref, yt_ref):
    """One batch tile:
         pre = h @ W_hh^T + x @ W_hx^T + (b_hh + b_hx)   (f32 accumulation)
         ht  = tanh(pre)
         yt  = ht @ W_xh^T + b_xh
    """
    # Two MXU dots accumulating into one f32 result (no wrapper concat).
    pre = jnp.dot(h_ref[...], w_hh_ref[...], preferred_element_type=jnp.float32)
    pre = pre + jnp.dot(x_ref[...], w_hx_ref[...],
                        preferred_element_type=jnp.float32)
    pre = pre + b1_ref[...]                      # f32 bias into f32 accumulator

    # tanh in f32 on the EUP slot (overlaps MXU pushes).
    ht = jnp.tanh(pre)
    ht_ref[...] = ht.astype(ht_ref.dtype)

    # Second stage: yt = ht @ W2 + b2  (f32 accumulation, f32 bias).
    yt = jnp.dot(ht.astype(w2_ref.dtype), w2_ref[...],
                 preferred_element_type=jnp.float32) + b2_ref[...]
    yt_ref[...] = yt.astype(yt_ref.dtype)


# --------------------------------------------------------------------------
# One-time parameter preparation (hoisted out of the per-step forward)
# --------------------------------------------------------------------------
def prepare_params(params, *, compute_dtype=jnp.bfloat16):
    """Repack PyTorch-layout weights into padded, transposed, MXU-friendly
    slabs.  Call ONCE and reuse the result across calls / timesteps.

    params: dict with W_hh [h,h], b_hh [h], W_hx [h,inp], b_hx [h],
            W_xh [out,h], b_xh [out]  (PyTorch nn.Linear layout).
    Returns (prepped_dict, out_x_dim).
    """
    h_dim = params["W_hh"].shape[0]
    inp_x_dim = params["W_hx"].shape[1]
    out_x_dim = params["W_xh"].shape[0]

    h_pad = _round_up(h_dim, 128)
    inp_pad = _round_up(inp_x_dim, 128)
    out_pad = _round_up(out_x_dim, 128)

    w_hh = jnp.zeros((h_pad, h_pad), compute_dtype).at[:h_dim, :h_dim].set(
        params["W_hh"].T.astype(compute_dtype))
    w_hx = jnp.zeros((inp_pad, h_pad), compute_dtype).at[:inp_x_dim, :h_dim].set(
        params["W_hx"].T.astype(compute_dtype))
    # Pre-added stage-1 bias, kept in f32 (added to the f32 accumulator).
    b1 = jnp.zeros((1, h_pad), jnp.float32).at[0, :h_dim].set(
        (params["b_hh"].astype(jnp.float32) + params["b_hx"].astype(jnp.float32)))
    w2 = jnp.zeros((h_pad, out_pad), compute_dtype).at[:h_dim, :out_x_dim].set(
        params["W_xh"].T.astype(compute_dtype))
    b2 = jnp.zeros((1, out_pad), jnp.float32).at[0, :out_x_dim].set(
        params["b_xh"].astype(jnp.float32))

    prepped = dict(w_hh=w_hh, w_hx=w_hx, b1=b1, w2=w2, b2=b2)
    return prepped, out_x_dim


# --------------------------------------------------------------------------
# Batch tiling choice
# --------------------------------------------------------------------------
def _choose_batch_tiling(B: int):
    # Tile cap: generous on 128-MiB-VMEM chips (v5e/v6e), conservative on v7x
    # (64 MiB physical) / unknown hardware.
    try:
        vmem_cap = pltpu.get_tpu_info().vmem_capacity_bytes
    except Exception:
        vmem_cap = 64 << 20
    max_tm = 1024 if vmem_cap >= (128 << 20) else 512

    # >=2 batch tiles whenever the batch is big enough, so the "parallel"
    # batch axis can shard across v7x's two TensorCores; tile size chosen so
    # padding waste is bounded to <8 rows (no "B=300 -> pad to 512" blowup).
    n_tiles = max(pl.cdiv(B, max_tm), 2 if B >= 16 else 1)
    tm = _round_up(pl.cdiv(B, n_tiles), 8)
    b_pad = tm * n_tiles
    return tm, b_pad, n_tiles


# --------------------------------------------------------------------------
# Forward
# --------------------------------------------------------------------------
@functools.partial(
    jax.jit,
    static_argnames=("out_x_dim", "single_buffer_weights", "interpret"))
def _rnn_cell_forward(ht_1, xt, prepped, *, out_x_dim, single_buffer_weights,
                      interpret):
    B, h_dim = ht_1.shape
    _, inp_x_dim = xt.shape
    out_dtype = ht_1.dtype

    w_hh, w_hx, b1, w2, b2 = (prepped["w_hh"], prepped["w_hx"], prepped["b1"],
                              prepped["w2"], prepped["b2"])
    compute_dtype = w_hh.dtype
    h_pad = w_hh.shape[0]
    inp_pad = w_hx.shape[0]
    out_pad = w2.shape[1]

    # ---- batch tiling -----------------------------------------------------
    tm, b_pad, n_tiles = _choose_batch_tiling(B)

    # ---- pad + cast activations (separate h / x inputs, no concat) --------
    h_p = jnp.zeros((b_pad, h_pad), compute_dtype).at[:B, :h_dim].set(
        ht_1.astype(compute_dtype))
    x_p = jnp.zeros((b_pad, inp_pad), compute_dtype).at[:B, :inp_x_dim].set(
        xt.astype(compute_dtype))

    # ---- VMEM budget + cost estimate ---------------------------------------
    w_itemsize = jnp.dtype(compute_dtype).itemsize
    o_itemsize = jnp.dtype(out_dtype).itemsize
    w_bytes = (w_hh.size + w_hx.size + w2.size) * w_itemsize
    b_bytes = (b1.size + b2.size) * 4
    act_tile_bytes = tm * (h_pad + inp_pad) * w_itemsize       # per buffer
    out_tile_bytes = tm * (h_pad + out_pad) * o_itemsize       # per buffer
    # Conservative (weights x2 also covers the double-buffered fallback path).
    need = 2 * (w_bytes + b_bytes) + 2 * act_tile_bytes + 2 * out_tile_bytes
    vmem_limit = int(min(max(2 * need, 16 << 20), 48 << 20))   # cap for v7x

    cost = pl.CostEstimate(
        flops=2 * b_pad * (h_pad * h_pad + inp_pad * h_pad + h_pad * out_pad),
        transcendentals=b_pad * h_pad,
        bytes_accessed=(w_bytes + b_bytes
                        + b_pad * (h_pad + inp_pad) * w_itemsize
                        + b_pad * (h_pad + out_pad) * o_itemsize),
    )

    # Weights/biases have constant index_maps -> no benefit from double
    # buffering; request a single resident buffer when supported.
    def _resident_spec(shape):
        if single_buffer_weights:
            return pl.BlockSpec(shape, lambda i: (0, 0),
                                pipeline_mode=pl.Buffered(1))
        return pl.BlockSpec(shape, lambda i: (0, 0))

    ht_p, yt_p = pl.pallas_call(
        _rnn_cell_kernel,
        out_shape=(
            jax.ShapeDtypeStruct((b_pad, h_pad), out_dtype),
            jax.ShapeDtypeStruct((b_pad, out_pad), out_dtype),
        ),
        grid_spec=pltpu.PrefetchScalarGridSpec(
            num_scalar_prefetch=0,
            grid=(n_tiles,),
            in_specs=[
                pl.BlockSpec((tm, h_pad), lambda i: (i, 0)),     # ht_1 tile
                pl.BlockSpec((tm, inp_pad), lambda i: (i, 0)),   # xt tile
                _resident_spec((h_pad, h_pad)),                   # W_hh^T
                _resident_spec((inp_pad, h_pad)),                 # W_hx^T
                _resident_spec((1, h_pad)),                       # b_hh+b_hx
                _resident_spec((h_pad, out_pad)),                 # W_xh^T
                _resident_spec((1, out_pad)),                     # b_xh
            ],
            out_specs=(
                pl.BlockSpec((tm, h_pad), lambda i: (i, 0)),
                pl.BlockSpec((tm, out_pad), lambda i: (i, 0)),
            ),
        ),
        compiler_params=pltpu.CompilerParams(
            dimension_semantics=("parallel",),
            vmem_limit_bytes=vmem_limit,
        ),
        cost_estimate=cost,
        interpret=interpret,
    )(h_p, x_p, w_hh, w_hx, b1, w2, b2)

    # Strip padding.
    return ht_p[:B, :h_dim], yt_p[:B, :out_x_dim]


_SINGLE_BUFFER_OK = None  # cached capability probe for pl.Buffered(1)


def rnn_cell_forward(ht_1, xt, prepped, *, out_x_dim, interpret=False):
    """Single RNNCell step. `prepped` comes from prepare_params (do it once)."""
    global _SINGLE_BUFFER_OK
    if _SINGLE_BUFFER_OK is not False:
        try:
            out = _rnn_cell_forward(ht_1, xt, prepped, out_x_dim=out_x_dim,
                                    single_buffer_weights=True,
                                    interpret=interpret)
            out = jax.block_until_ready(out)
            _SINGLE_BUFFER_OK = True
            return out
        except Exception:
            # pipeline_mode=pl.Buffered(1) not supported by this Pallas build;
            # fall back to default double-buffered resident weights.
            _SINGLE_BUFFER_OK = False
    return _rnn_cell_forward(ht_1, xt, prepped, out_x_dim=out_x_dim,
                             single_buffer_weights=False, interpret=interpret)


# --------------------------------------------------------------------------
# Parameter init (PyTorch nn.Linear-style) and self-test
# --------------------------------------------------------------------------
def init_params(key, h_dim, inp_x_dim, out_x_dim, dtype=jnp.float32):
    ks = jax.random.split(key, 6)

    def lin(kw, kb, out_f, in_f):
        bound = 1.0 / jnp.sqrt(in_f)
        W = jax.random.uniform(kw, (out_f, in_f), dtype, -bound, bound)
        b = jax.random.uniform(kb, (out_f,), dtype, -bound, bound)
        return W, b

    W_hh, b_hh = lin(ks[0], ks[1], h_dim, h_dim)
    W_hx, b_hx = lin(ks[2], ks[3], h_dim, inp_x_dim)
    W_xh, b_xh = lin(ks[4], ks[5], out_x_dim, h_dim)
    return dict(W_hh=W_hh, b_hh=b_hh, W_hx=W_hx, b_hx=b_hx,
                W_xh=W_xh, b_xh=b_xh)


if __name__ == "__main__":
    B, h_dim, inp_x_dim, out_x_dim = 4, 32, 16, 8

    key = jax.random.PRNGKey(0)
    k_p, k_h, k_x = jax.random.split(key, 3)

    params = init_params(k_p, h_dim, inp_x_dim, out_x_dim)
    ht_1 = jax.random.normal(k_h, (B, h_dim), jnp.float32)
    xt = jax.random.normal(k_x, (B, inp_x_dim), jnp.float32)

    # Pure-JAX reference (PyTorch semantics).
    ht_ref = jnp.tanh(ht_1 @ params["W_hh"].T + params["b_hh"]
                      + xt @ params["W_hx"].T + params["b_hx"])
    yt_ref = ht_ref @ params["W_xh"].T + params["b_xh"]

    # --- f32 weights: strict check of the exact module semantics -----------
    prepped_f32, out_dim = prepare_params(params, compute_dtype=jnp.float32)
    ht32, yt32 = rnn_cell_forward(ht_1, xt, prepped_f32, out_x_dim=out_dim)
    jax.block_until_ready((ht32, yt32))
    assert ht32.shape == (B, h_dim) and yt32.shape == (B, out_x_dim)
    assert jnp.allclose(ht32, ht_ref, atol=1e-5), "ht mismatch (f32)"
    assert jnp.allclose(yt32, yt_ref, atol=1e-5), "yt mismatch (f32)"

    # --- bf16 weights/activations: recommended HBM-bound fast path ---------
    # (f32 accumulation + f32 biases kept; looser tolerance due to bf16.)
    prepped_bf16, out_dim = prepare_params(params, compute_dtype=jnp.bfloat16)
    ht16, yt16 = rnn_cell_forward(ht_1, xt, prepped_bf16, out_x_dim=out_dim)
    jax.block_until_ready((ht16, yt16))
    assert jnp.allclose(ht16, ht_ref, atol=5e-2), "ht mismatch (bf16)"
    assert jnp.allclose(yt16, yt_ref, atol=5e-2), "yt mismatch (bf16)"

    print("KERNEL_OK")
</pallas_src>

<mosaic_0001>
module attributes {stable_mosaic.version = 11 : i64} {
  func.func @_rnn_cell_kernel(%arg0: i32, %arg1: memref<8x128xf32, #tpu.memory_space<vmem>>, %arg2: memref<8x128xf32, #tpu.memory_space<vmem>>, %arg3: memref<128x128xf32, #tpu.memory_space<vmem>>, %arg4: memref<128x128xf32, #tpu.memory_space<vmem>>, %arg5: memref<1x128xf32, #tpu.memory_space<vmem>>, %arg6: memref<128x128xf32, #tpu.memory_space<vmem>>, %arg7: memref<1x128xf32, #tpu.memory_space<vmem>>, %arg8: memref<8x128xf32, #tpu.memory_space<vmem>>, %arg9: memref<8x128xf32, #tpu.memory_space<vmem>>) attributes {dimension_semantics = [#tpu.dimension_semantics<parallel>], iteration_bounds = array<i64: 1>, scalar_prefetch = 0 : i64, scratch_operands = 0 : i64, tpu.core_type = #tpu.core_type<tc>, window_params = [{transform_indices = @transform_0, window_bounds = array<i64: 8, 128>}, {transform_indices = @transform_1, window_bounds = array<i64: 8, 128>}, {pipeline_mode = #tpu.pipeline_mode<synchronous>, transform_indices = @transform_2, window_bounds = array<i64: 128, 128>}, {pipeline_mode = #tpu.pipeline_mode<synchronous>, transform_indices = @transform_3, window_bounds = array<i64: 128, 128>}, {pipeline_mode = #tpu.pipeline_mode<synchronous>, transform_indices = @transform_4, window_bounds = array<i64: 1, 128>}, {pipeline_mode = #tpu.pipeline_mode<synchronous>, transform_indices = @transform_5, window_bounds = array<i64: 128, 128>}, {pipeline_mode = #tpu.pipeline_mode<synchronous>, transform_indices = @transform_6, window_bounds = array<i64: 1, 128>}, {transform_indices = @transform_7, window_bounds = array<i64: 8, 128>}, {transform_indices = @transform_8, window_bounds = array<i64: 8, 128>}]} {
    %c0 = arith.constant 0 : index
    %c0_0 = arith.constant 0 : index
    %0 = vector.load %arg1[%c0, %c0_0] : memref<8x128xf32, #tpu.memory_space<vmem>>, vector<8x128xf32>
    %c0_1 = arith.constant 0 : index
    %c0_2 = arith.constant 0 : index
    %1 = vector.load %arg3[%c0_1, %c0_2] : memref<128x128xf32, #tpu.memory_space<vmem>>, vector<128x128xf32>
    %cst = arith.constant dense<0.000000e+00> : vector<8x128xf32>
    %2 = tpu.matmul %0, %1, %cst {dimension_numbers = #tpu.dot_dimension_numbers<[1], [0], [0], [1], [0, 0, 1, 1], [], []>} : vector<8x128xf32>, vector<128x128xf32>, vector<8x128xf32> -> vector<8x128xf32>
    %c0_3 = arith.constant 0 : index
    %c0_4 = arith.constant 0 : index
    %3 = vector.load %arg2[%c0_3, %c0_4] : memref<8x128xf32, #tpu.memory_space<vmem>>, vector<8x128xf32>
    %c0_5 = arith.constant 0 : index
    %c0_6 = arith.constant 0 : index
    %4 = vector.load %arg4[%c0_5, %c0_6] : memref<128x128xf32, #tpu.memory_space<vmem>>, vector<128x128xf32>
    %cst_7 = arith.constant dense<0.000000e+00> : vector<8x128xf32>
    %5 = tpu.matmul %3, %4, %cst_7 {dimension_numbers = #tpu.dot_dimension_numbers<[1], [0], [0], [1], [0, 0, 1, 1], [], []>} : vector<8x128xf32>, vector<128x128xf32>, vector<8x128xf32> -> vector<8x128xf32>
    %6 = arith.addf %2, %5 : vector<8x128xf32>
    %c0_8 = arith.constant 0 : index
    %c0_9 = arith.constant 0 : index
    %7 = vector.load %arg5[%c0_8, %c0_9] : memref<1x128xf32, #tpu.memory_space<vmem>>, vector<1x128xf32>
    %8 = vector.broadcast %7 : vector<1x128xf32> to vector<8x128xf32>
    %9 = arith.addf %6, %8 : vector<8x128xf32>
    %10 = math.tanh %9 : vector<8x128xf32>
    %c0_10 = arith.constant 0 : index
    %c0_11 = arith.constant 0 : index
    %11 = vector.load %arg8[%c0_10, %c0_11] : memref<8x128xf32, #tpu.memory_space<vmem>>, vector<8x128xf32>
    tpu.vector_store %arg8[%c0_10, %c0_11], %10 {strides = array<i32>} : memref<8x128xf32, #tpu.memory_space<vmem>>, vector<8x128xf32>,
    %c0_12 = arith.constant 0 : index
    %c0_13 = arith.constant 0 : index
    %12 = vector.load %arg6[%c0_12, %c0_13] : memref<128x128xf32, #tpu.memory_space<vmem>>, vector<128x128xf32>
    %cst_14 = arith.constant dense<0.000000e+00> : vector<8x128xf32>
    %13 = tpu.matmul %10, %12, %cst_14 {dimension_numbers = #tpu.dot_dimension_numbers<[1], [0], [0], [1], [0, 0, 1, 1], [], []>} : vector<8x128xf32>, vector<128x128xf32>, vector<8x128xf32> -> vector<8x128xf32>
    %c0_15 = arith.constant 0 : index
    %c0_16 = arith.constant 0 : index
    %14 = vector.load %arg7[%c0_15, %c0_16] : memref<1x128xf32, #tpu.memory_space<vmem>>, vector<1x128xf32>
    %15 = vector.broadcast %14 : vector<1x128xf32> to vector<8x128xf32>
    %16 = arith.addf %13, %15 : vector<8x128xf32>
    %c0_17 = arith.constant 0 : index
    %c0_18 = arith.constant 0 : index
    %17 = vector.load %arg9[%c0_17, %c0_18] : memref<8x128xf32, #tpu.memory_space<vmem>>, vector<8x128xf32>
    tpu.vector_store %arg9[%c0_17, %c0_18], %16 {strides = array<i32>} : memref<8x128xf32, #tpu.memory_space<vmem>>, vector<8x128xf32>,
    return
  }
  func.func @transform_0(%arg0: i32) -> (i32, i32) {
    %c0_i32 = arith.constant 0 : i32
    %c0_i32_0 = arith.constant 0 : i32
    return %arg0, %c0_i32 : i32, i32
  }
  func.func @transform_1(%arg0: i32) -> (i32, i32) {
    %c0_i32 = arith.constant 0 : i32
    %c0_i32_0 = arith.constant 0 : i32
    return %arg0, %c0_i32 : i32, i32
  }
  func.func @transform_2(%arg0: i32) -> (i32, i32) {
    %c0_i32 = arith.constant 0 : i32
    %c0_i32_0 = arith.constant 0 : i32
    %c0_i32_1 = arith.constant 0 : i32
    return %c0_i32, %c0_i32_0 : i32, i32
  }
  func.func @transform_3(%arg0: i32) -> (i32, i32) {
    %c0_i32 = arith.constant 0 : i32
    %c0_i32_0 = arith.constant 0 : i32
    %c0_i32_1 = arith.constant 0 : i32
    return %c0_i32, %c0_i32_0 : i32, i32
  }
  func.func @transform_4(%arg0: i32) -> (i32, i32) {
    %c0_i32 = arith.constant 0 : i32
    %c0_i32_0 = arith.constant 0 : i32
    %c0_i32_1 = arith.constant 0 : i32
    return %c0_i32, %c0_i32_0 : i32, i32
  }
  func.func @transform_5(%arg0: i32) -> (i32, i32) {
    %c0_i32 = arith.constant 0 : i32
    %c0_i32_0 = arith.constant 0 : i32
    %c0_i32_1 = arith.constant 0 : i32
    return %c0_i32, %c0_i32_0 : i32, i32
  }
  func.func @transform_6(%arg0: i32) -> (i32, i32) {
    %c0_i32 = arith.constant 0 : i32
    %c0_i32_0 = arith.constant 0 : i32
    %c0_i32_1 = arith.constant 0 : i32
    return %c0_i32, %c0_i32_0 : i32, i32
  }
  func.func @transform_7(%arg0: i32) -> (i32, i32) {
    %c0_i32 = arith.constant 0 : i32
    %c0_i32_0 = arith.constant 0 : i32
    return %arg0, %c0_i32 : i32, i32
  }
  func.func @transform_8(%arg0: i32) -> (i32, i32) {
    %c0_i32 = arith.constant 0 : i32
    %c0_i32_0 = arith.constant 0 : i32
    return %arg0, %c0_i32 : i32, i32
  }
}

module attributes {stable_mosaic.version = 11 : i64} {
  func.func @_rnn_cell_kernel(%arg0: i32, %arg1: memref<8x128xf32, #tpu.memory_space<vmem>>, %arg2: memref<8x128xf32, #tpu.memory_space<vmem>>, %arg3: memref<128x128xf32, #tpu.memory_space<vmem>>, %arg4: memref<128x128xf32, #tpu.memory_space<vmem>>, %arg5: memref<1x128xf32, #tpu.memory_space<vmem>>, %arg6: memref<128x128xf32, #tpu.memory_space<vmem>>, %arg7: memref<1x128xf32, #tpu.memory_space<vmem>>, %arg8: memref<8x128xf32, #tpu.memory_space<vmem>>, %arg9: memref<8x128xf32, #tpu.memory_space<vmem>>) attributes {dimension_semantics = [#tpu.dimension_semantics<parallel>], iteration_bounds = array<i64: 1>, scalar_prefetch = 0 : i64, scratch_operands = 0 : i64, tpu.core_type = #tpu.core_type<tc>, window_params = [{transform_indices = @transform_0, window_bounds = array<i64: 8, 128>}, {transform_indices = @transform_1, window_bounds = array<i64: 8, 128>}, {pipeline_mode = #tpu.pipeline_mode<synchronous>, transform_indices = @transform_2, window_bounds = array<i64: 128, 128>}, {pipeline_mode = #tpu.pipeline_mode<synchronous>, transform_indices = @transform_3, window_bounds = array<i64: 128, 128>}, {pipeline_mode = #tpu.pipeline_mode<synchronous>, transform_indices = @transform_4, window_bounds = array<i64: 1, 128>}, {pipeline_mode = #tpu.pipeline_mode<synchronous>, transform_indices = @transform_5, window_bounds = array<i64: 128, 128>}, {pipeline_mode = #tpu.pipeline_mode<synchronous>, transform_indices = @transform_6, window_bounds = array<i64: 1, 128>}, {transform_indices = @transform_7, window_bounds = array<i64: 8, 128>}, {transform_indices = @transform_8, window_bounds = array<i64: 8, 128>}]} {
    %c0 = arith.constant 0 : index
    %c0_0 = arith.constant 0 : index
    %0 = vector.load %arg1[%c0, %c0_0] : memref<8x128xf32, #tpu.memory_space<vmem>>, vector<8x128xf32>
    %c0_1 = arith.constant 0 : index
    %c0_2 = arith.constant 0 : index
    %1 = vector.load %arg3[%c0_1, %c0_2] : memref<128x128xf32, #tpu.memory_space<vmem>>, vector<128x128xf32>
    %cst = arith.constant dense<0.000000e+00> : vector<8x128xf32>
    %2 = tpu.matmul %0, %1, %cst {dimension_numbers = #tpu.dot_dimension_numbers<[1], [0], [0], [1], [0, 0, 1, 1], [], []>} : vector<8x128xf32>, vector<128x128xf32>, vector<8x128xf32> -> vector<8x128xf32>
    %c0_3 = arith.constant 0 : index
    %c0_4 = arith.constant 0 : index
    %3 = vector.load %arg2[%c0_3, %c0_4] : memref<8x128xf32, #tpu.memory_space<vmem>>, vector<8x128xf32>
    %c0_5 = arith.constant 0 : index
    %c0_6 = arith.constant 0 : index
    %4 = vector.load %arg4[%c0_5, %c0_6] : memref<128x128xf32, #tpu.memory_space<vmem>>, vector<128x128xf32>
    %cst_7 = arith.constant dense<0.000000e+00> : vector<8x128xf32>
    %5 = tpu.matmul %3, %4, %cst_7 {dimension_numbers = #tpu.dot_dimension_numbers<[1], [0], [0], [1], [0, 0, 1, 1], [], []>} : vector<8x128xf32>, vector<128x128xf32>, vector<8x128xf32> -> vector<8x128xf32>
    %6 = arith.addf %2, %5 : vector<8x128xf32>
    %c0_8 = arith.constant 0 : index
    %c0_9 = arith.constant 0 : index
    %7 = vector.load %arg5[%c0_8, %c0_9] : memref<1x128xf32, #tpu.memory_space<vmem>>, vector<1x128xf32>
    %8 = vector.broadcast %7 : vector<1x128xf32> to vector<8x128xf32>
    %9 = arith.addf %6, %8 : vector<8x128xf32>
    %10 = math.tanh %9 : vector<8x128xf32>
    %c0_10 = arith.constant 0 : index
    %c0_11 = arith.constant 0 : index
    %11 = vector.load %arg8[%c0_10, %c0_11] : memref<8x128xf32, #tpu.memory_space<vmem>>, vector<8x128xf32>
    tpu.vector_store %arg8[%c0_10, %c0_11], %10 {strides = array<i32>} : memref<8x128xf32, #tpu.memory_space<vmem>>, vector<8x128xf32>,
    %c0_12 = arith.constant 0 : index
    %c0_13 = arith.constant 0 : index
    %12 = vector.load %arg6[%c0_12, %c0_13] : memref<128x128xf32, #tpu.memory_space<vmem>>, vector<128x128xf32>
    %cst_14 = arith.constant dense<0.000000e+00> : vector<8x128xf32>
    %13 = tpu.matmul %10, %12, %cst_14 {dimension_numbers = #tpu.dot_dimension_numbers<[1], [0], [0], [1], [0, 0, 1, 1], [], []>} : vector<8x128xf32>, vector<128x128xf32>, vector<8x128xf32> -> vector<8x128xf32>
    %c0_15 = arith.constant 0 : index
    %c0_16 = arith.constant 0 : index
    %14 = vector.load %arg7[%c0_15, %c0_16] : memref<1x128xf32, #tpu.memory_space<vmem>>, vector<1x128xf32>
    %15 = vector.broadcast %14 : vector<1x128xf32> to vector<8x128xf32>
    %16 = arith.addf %13, %15 : vector<8x128xf32>
    %c0_17 = arith.constant 0 : index
    %c0_18 = arith.constant 0 : index
    %17 = vector.load %arg9[%c0_17, %c0_18] : memref<8x128xf32, #tpu.memory_space<vmem>>, vector<8x128xf32>
    tpu.vector_store %arg9[%c0_17, %c0_18], %16 {strides = array<i32>} : memref<8x128xf32, #tpu.memory_space<vmem>>, vector<8x128xf32>,
    return
  }
  func.func @transform_0(%arg0: i32) -> (i32, i32) {
    %c0_i32 = arith.constant 0 : i32
    %c0_i32_0 = arith.constant 0 : i32
    return %arg0, %c0_i32 : i32, i32
  }
  func.func @transform_1(%arg0: i32) -> (i32, i32) {
    %c0_i32 = arith.constant 0 : i32
    %c0_i32_0 = arith.constant 0 : i32
    return %arg0, %c0_i32 : i32, i32
  }
  func.func @transform_2(%arg0: i32) -> (i32, i32) {
    %c0_i32 = arith.constant 0 : i32
    %c0_i32_0 = arith.constant 0 : i32
    %c0_i32_1 = arith.constant 0 : i32
    return %c0_i32, %c0_i32_0 : i32, i32
  }
  func.func @transform_3(%arg0: i32) -> (i32, i32) {
    %c0_i32 = arith.constant 0 : i32
    %c0_i32_0 = arith.constant 0 : i32
    %c0_i32_1 = arith.constant 0 : i32
    return %c0_i32, %c0_i32_0 : i32, i32
  }
  func.func @transform_4(%arg0: i32) -> (i32, i32) {
    %c0_i32 = arith.constant 0 : i32
    %c0_i32_0 = arith.constant 0 : i32
    %c0_i32_1 = arith.constant 0 : i32
    return %c0_i32, %c0_i32_0 : i32, i32
  }
  func.func @transform_5(%arg0: i32) -> (i32, i32) {
    %c0_i32 = arith.constant 0 : i32
    %c0_i32_0 = arith.constant 0 : i32
    %c0_i32_1 = arith.constant 0 : i32
    return %c0_i32, %c0_i32_0 : i32, i32
  }
  func.func @transform_6(%arg0: i32) -> (i32, i32) {
    %c0_i32 = arith.constant 0 : i32
    %c0_i32_0 = arith.constant 0 : i32
    %c0_i32_1 = arith.constant 0 : i32
    return %c0_i32, %c0_i32_0 : i32, i32
  }
  func.func @transform_7(%arg0: i32) -> (i32, i32) {
    %c0_i32 = arith.constant 0 : i32
    %c0_i32_0 = arith.constant 0 : i32
    return %arg0, %c0_i32 : i32, i32
  }
  func.func @transform_8(%arg0: i32) -> (i32, i32) {
    %c0_i32 = arith.constant 0 : i32
    %c0_i32_0 = arith.constant 0 : i32
    return %arg0, %c0_i32 : i32, i32
  }
}

</mosaic_0001>

<bundles_post_ra>
// kernel: _rnn_cell_forward.1
= control target key start
LH: loop header
LB: loop body
LE: loop exit
PB: predicated region body
PF: predicated region fallthrough
CT: control target
= control target key end

     0   :  { %14 = vsyncpa [#allocation3], 0  ;;  %s820_s0 = inlined_call_operand.vmem [shape: f32[8,128], index: 0, kind: input, shape index: {}]   ;;  %s821_s1 = inlined_call_operand.vmem [shape: f32[8,128], index: 1, kind: input, shape index: {}]   ;;  %s822_s2 = inlined_call_operand.hbm [shape: f32[128,128], index: 2, kind: input, shape index: {}]   ;;  %s823_s3 = inlined_call_operand.hbm [shape: f32[128,128], index: 3, kind: input, shape index: {}]   ;;  %s824_s4 = inlined_call_operand.vmem [shape: f32[1,128], index: 4, kind: input, shape index: {}]   ;;  %s825_s5 = inlined_call_operand.hbm [shape: f32[128,128], index: 5, kind: input, shape index: {}]   ;;  %s826_s6 = inlined_call_operand.vmem [shape: f32[1,128], index: 6, kind: input, shape index: {}]   ;;  %s827_s7 = inlined_call_operand.vmem [shape: f32[8,128], index: 7, kind: output, shape index: {0}]   ;;  %s828_s8 = inlined_call_operand.vmem [shape: f32[8,128], index: 8, kind: output, shape index: {1}]  }
   0x1   :  { %15 = vsyncpa [#allocation5], 0  ;;  %s667_s27 = smov [#allocation4]   ;;  %s668_s29 = smov [#allocation2]  }
   0x2   :  { %s37_s28 = sshll.u32 %s667_s27, 4  ;;  %s25_s30 = sshll.u32 %s668_s29, 4  ;;  %s38_s28 = int_to_ptr.vmem [resolvable:$true] %s37_s28  ;;  %s720_s30 = int_to_ptr.vmem [resolvable:$true] %s25_s30 }
   0x3   :  { %s597_s11 = scalar_lea.hbm %s823_s3, 2048 }
   0x4   :  { %p598_p0 = scmp.ne.s32.totalorder %s823_s3, %s597_s11  ;;  %p601_p1 = scmp.lt.u32.totalorder %s597_s11, %s823_s3 }
   0x6   :  { %p603_p2 = pnand %p601_p1, %p598_p0 }
   0x8   :  { %606 = shalt.err (!%p603_p2)
}
   0x9   :  { %s607_s16 = scalar_lea.vmem %s38_s28, 2048  ;;  %p612_p4 = scmp.lt.s32.totalorder %s38_s28, %s38_s28 }
   0xa   :  { %p608_p3 = scmp.ne.s32.totalorder %s38_s28, %s607_s16  ;;  %p613_p5 = scmp.lt.s32.totalorder %s607_s16, %s607_s16 }
   0xc   :  { %p614_p6 = por %p613_p5, %p612_p4 }
   0xe   :  { %p615_p7 = pnand %p614_p6, %p608_p3 }
  0x10   :  { %618 = shalt.err (!%p615_p7)
}
  0x11   :  { %s669_s17 = smov 128   ;;  %s670_s18 = smov 8  }
  0x12   :  { %43 = dma.hbm_to_vmem [thread:$0]  %s823_s3, 2048, %s38_s28, [#allocation5], %s669_s17, %s669_s17, %s670_s18  }
  0x13   :  { %s619_s23 = scalar_lea.hbm %s822_s2, 2048 }
  0x14   :  { %p620_p8 = scmp.ne.s32.totalorder %s822_s2, %s619_s23  ;;  %p623_p9 = scmp.lt.u32.totalorder %s619_s23, %s822_s2 }
  0x16   :  { %p625_p10 = pnand %p623_p9, %p620_p8 }
  0x18   :  { %628 = shalt.err (!%p625_p10)
}
  0x19   :  { %s629_s29 = scalar_lea.vmem %s720_s30, 2048  ;;  %p634_p12 = scmp.lt.s32.totalorder %s720_s30, %s720_s30 }
  0x1a   :  { %p630_p11 = scmp.ne.s32.totalorder %s720_s30, %s629_s29  ;;  %p635_p13 = scmp.lt.s32.totalorder %s629_s29, %s629_s29 }
  0x1c   :  { %p636_p0 = por %p635_p13, %p634_p12 }
  0x1e   :  { %p637_p1 = pnand %p636_p0, %p630_p11 }
  0x20   :  { %640 = shalt.err (!%p637_p1)
}
  0x21   :  { %31 = dma.hbm_to_vmem [thread:$0]  %s822_s2, 2048, %s720_s30, [#allocation3], %s669_s17, %s669_s17, %s670_s18  }
  0x22   :  { %s671_s9 = smov [#allocation6]   ;;  %s641_s13 = scalar_lea.hbm %s825_s5, 2048 }
  0x23   :  { %s51_s10 = sshll.u32 %s671_s9, 4  ;;  %p642_p2 = scmp.ne.s32.totalorder %s825_s5, %s641_s13  ;;  %s52_s10 = int_to_ptr.vmem [resolvable:$true] %s51_s10 }
  0x24   :  { %p645_p3 = scmp.lt.u32.totalorder %s641_s13, %s825_s5 }
  0x26   :  { %p647_p4 = pnand %p645_p3, %p642_p2 }
  0x28   :  { %650 = shalt.err (!%p647_p4)
}
  0x29   :  { %s651_s20 = scalar_lea.vmem %s52_s10, 2048  ;;  %p656_p6 = scmp.lt.s32.totalorder %s52_s10, %s52_s10 }
  0x2a   :  { %p652_p5 = scmp.ne.s32.totalorder %s52_s10, %s651_s20  ;;  %p657_p7 = scmp.lt.s32.totalorder %s651_s20, %s651_s20 }
  0x2c   :  { %p658_p8 = por %p657_p7, %p656_p6 }
  0x2e   :  { %p659_p9 = pnand %p658_p8, %p652_p5 }
  0x30   :  { %662 = shalt.err (!%p659_p9)
}
  0x31   :  { %57 = dma.hbm_to_vmem [thread:$0]  %s825_s5, 2048, %s52_s10, [#allocation5], %s669_s17, %s669_s17, %s670_s18  }
  0x32   :  { %663 = dma.done.wait [#allocation3], 2048  }
  0x33   :  { %664 = vsyncadd [#allocation3], 4294965248 }
  0x34   :  { %665 = dma.done.wait [#allocation5], 4096  }
  0x35   :  { %666 = vsyncadd [#allocation5], 4294963200  ;;  %v672_v0 = vmov 0.0|0.0   ;;  %vm673_vm0 = vmmov 0   ;;  %v674_v1 = vmov 0.0   ;;  %v87_v2 = vld [vmem:[#allocation4] sm:$0xff] }
  0x36   :  { %515 = vmatprep.subr.bf16.mxu0 %v672_v0  ;;  %539 = vmatprep.subr.bf16.mxu1 %v672_v0  ;;  %v88_v3 = vld [vmem:[#allocation4 + $0x8] sm:$0xff]  ;;  %v70_v4 = vld [vmem:[#allocation2] sm:$0xff]  ;;  %v89_v7 = vld [vmem:[#allocation4 + $0x10] sm:$0xff] }
  0x37   :  { %442 = vmatprep.mubr.msk.f32.mxu0 %vm673_vm0, %v674_v1  ;;  %477 = vmatprep.mubr.msk.f32.mxu1 %vm673_vm0, %v674_v1  ;;  %v516_v5 = vpack.c.bf16 %v88_v3, %v87_v2  ;;  %v71_v6 = vld [vmem:[#allocation2 + $0x8] sm:$0xff]  ;;  %v90_v8 = vld [vmem:[#allocation4 + $0x18] sm:$0xff]  ;;  %v72_v10 = vld [vmem:[#allocation2 + $0x10] sm:$0xff] }
  0x38   :  { %v540_v9 = vpack.c.bf16 %v71_v6, %v70_v4  ;;  %v73_v11 = vld [vmem:[#allocation2 + $0x18] sm:$0xff]  ;;  %v519_v12 = vpack.c.bf16 %v90_v8, %v89_v7  ;;  %v91_v14 = vld [vmem:[#allocation4 + $0x20] sm:$0xff]  ;;  %v92_v15 = vld [vmem:[#allocation4 + $0x28] sm:$0xff] }
  0x39   :  { %517 = vmatpush3.bf16.msra.mxu0 %v516_v5  ;;  %v543_v13 = vpack.c.bf16 %v73_v11, %v72_v10  ;;  %v74_v16 = vld [vmem:[#allocation2 + $0x20] sm:$0xff]  ;;  %v75_v17 = vld [vmem:[#allocation2 + $0x28] sm:$0xff]  ;;  %v522_v18 = vpack.c.bf16 %v92_v15, %v91_v14  ;;  %v93_v20 = vld [vmem:[#allocation4 + $0x30] sm:$0xff] }
  0x3a   :  { %541 = vmatpush3.bf16.msra.mxu1 %v540_v9  ;;  %518 = vmatprep.subr.bf16.mxu0 %v672_v0  ;;  %v546_v19 = vpack.c.bf16 %v75_v17, %v74_v16  ;;  %v94_v21 = vld [vmem:[#allocation4 + $0x38] sm:$0xff]  ;;  %v76_v22 = vld [vmem:[#allocation2 + $0x30] sm:$0xff]  ;;  %v95_v26 = vld [vmem:[#allocation4 + $0x40] sm:$0xff] }
  0x3b   :  { %542 = vmatprep.subr.bf16.mxu1 %v672_v0  ;;  %v77_v23 = vld [vmem:[#allocation2 + $0x38] sm:$0xff]  ;;  %v525_v24 = vpack.c.bf16 %v94_v21, %v93_v20  ;;  %v96_v27 = vld [vmem:[#allocation4 + $0x48] sm:$0xff]  ;;  %v78_v28 = vld [vmem:[#allocation2 + $0x40] sm:$0xff] }
  0x3c   :  { %v549_v25 = vpack.c.bf16 %v77_v23, %v76_v22  ;;  %v79_v29 = vld [vmem:[#allocation2 + $0x48] sm:$0xff]  ;;  %v528_v30 = vpack.c.bf16 %v96_v27, %v95_v26  ;;  %v97_v32 = vld [vmem:[#allocation4 + $0x50] sm:$0xff]  ;;  %v98_v33 = vld [vmem:[#allocation4 + $0x58] sm:$0xff] }
  0x3d   :  { %520 = vmatpush3.bf16.msra.mxu0 %v519_v12  ;;  %v552_v31 = vpack.c.bf16 %v79_v29, %v78_v28  ;;  %v80_v34 = vld [vmem:[#allocation2 + $0x50] sm:$0xff]  ;;  %v81_v35 = vld [vmem:[#allocation2 + $0x58] sm:$0xff]  ;;  %v531_v36 = vpack.c.bf16 %v98_v33, %v97_v32  ;;  %v99_v38 = vld [vmem:[#allocation4 + $0x60] sm:$0xff] }
  0x3e   :  { %544 = vmatpush3.bf16.msra.mxu1 %v543_v13  ;;  %521 = vmatprep.subr.bf16.mxu0 %v672_v0  ;;  %v555_v37 = vpack.c.bf16 %v81_v35, %v80_v34  ;;  %v100_v39 = vld [vmem:[#allocation4 + $0x68] sm:$0xff]  ;;  %v82_v40 = vld [vmem:[#allocation2 + $0x60] sm:$0xff]  ;;  %v101_v44 = vld [vmem:[#allocation4 + $0x70] sm:$0xff] }
  0x3f   :  { %545 = vmatprep.subr.bf16.mxu1 %v672_v0  ;;  %v83_v41 = vld [vmem:[#allocation2 + $0x68] sm:$0xff]  ;;  %v534_v42 = vpack.c.bf16 %v100_v39, %v99_v38  ;;  %v102_v45 = vld [vmem:[#allocation4 + $0x78] sm:$0xff]  ;;  %v84_v46 = vld [vmem:[#allocation2 + $0x70] sm:$0xff] }
  0x40   :  { %v558_v43 = vpack.c.bf16 %v83_v41, %v82_v40  ;;  %v85_v47 = vld [vmem:[#allocation2 + $0x78] sm:$0xff]  ;;  %v537_v48 = vpack.c.bf16 %v102_v45, %v101_v44  ;;  %v253_v50 = vld [vmem:[#allocation6] sm:$0xff]  ;;  %v254_v51 = vld [vmem:[#allocation6 + $0x8] sm:$0xff] }
  0x41   :  { %523 = vmatpush3.bf16.msra.mxu0 %v522_v18  ;;  %v561_v49 = vpack.c.bf16 %v85_v47, %v84_v46  ;;  %v86_v52 = vld [vmem:[%s821_s1] sm:$0xff]  ;;  %v564_v53 = vpack.c.bf16 %v254_v51, %v253_v50  ;;  %v255_v55 = vld [vmem:[#allocation6 + $0x10] sm:$0xff]  ;;  %v256_v56 = vld [vmem:[#allocation6 + $0x18] sm:$0xff] }
  0x42   :  { %547 = vmatpush3.bf16.msra.mxu1 %v546_v19  ;;  %524 = vmatprep.subr.bf16.mxu0 %v672_v0  ;;  %v69_v54 = vld [vmem:[%s820_s0] sm:$0xff]  ;;  %v567_v57 = vpack.c.bf16 %v256_v56, %v255_v55  ;;  %v258_v59 = vld [vmem:[#allocation6 + $0x28] sm:$0xff]  ;;  %v259_v61 = vld [vmem:[#allocation6 + $0x30] sm:$0xff] }
  0x43   :  { %548 = vmatprep.subr.bf16.mxu1 %v672_v0  ;;  %v257_v58 = vld [vmem:[#allocation6 + $0x20] sm:$0xff]  ;;  %v260_v62 = vld [vmem:[#allocation6 + $0x38] sm:$0xff]  ;;  %v262_v3 = vld [vmem:[#allocation6 + $0x48] sm:$0xff] }
  0x44   :  { %v570_v60 = vpack.c.bf16 %v258_v59, %v257_v58  ;;  %v573_v63 = vpack.c.bf16 %v260_v62, %v259_v61  ;;  %v261_v2 = vld [vmem:[#allocation6 + $0x40] sm:$0xff]  ;;  %v264_v5 = vld [vmem:[#allocation6 + $0x58] sm:$0xff]  ;;  %v266_v8 = vld [vmem:[#allocation6 + $0x68] sm:$0xff] }
  0x45   :  { %526 = vmatpush3.bf16.msra.mxu0 %v525_v24  ;;  %v576_v4 = vpack.c.bf16 %v262_v3, %v261_v2  ;;  %v265_v7 = vld [vmem:[#allocation6 + $0x60] sm:$0xff]  ;;  %v267_v10 = vld [vmem:[#allocation6 + $0x70] sm:$0xff]  ;;  %v268_v11 = vld [vmem:[#allocation6 + $0x78] sm:$0xff] }
  0x46   :  { %550 = vmatpush3.bf16.msra.mxu1 %v549_v25  ;;  %527 = vmatprep.subr.bf16.mxu0 %v672_v0  ;;  %v582_v9 = vpack.c.bf16 %v266_v8, %v265_v7  ;;  %v585_v12 = vpack.c.bf16 %v268_v11, %v267_v10  ;;  %v357_v15 = vld [vmem:[%s824_s4] ss:$0 sm:$0xff] }
  0x47   :  { %551 = vmatprep.subr.bf16.mxu1 %v672_v0 }
  0x49   :  { %529 = vmatpush3.bf16.msra.mxu0 %v528_v30 }
  0x4a   :  { %553 = vmatpush3.bf16.msra.mxu1 %v552_v31  ;;  %530 = vmatprep.subr.bf16.mxu0 %v672_v0 }
  0x4b   :  { %554 = vmatprep.subr.bf16.mxu1 %v672_v0 }
  0x4d   :  { %532 = vmatpush3.bf16.msra.mxu0 %v531_v36 }
  0x4e   :  { %556 = vmatpush3.bf16.msra.mxu1 %v555_v37  ;;  %533 = vmatprep.subr.bf16.mxu0 %v672_v0 }
  0x4f   :  { %557 = vmatprep.subr.bf16.mxu1 %v672_v0 }
  0x51   :  { %535 = vmatpush3.bf16.msra.mxu0 %v534_v42 }
  0x52   :  { %559 = vmatpush3.bf16.msra.mxu1 %v558_v43  ;;  %536 = vmatprep.subr.bf16.mxu0 %v672_v0 }
  0x53   :  { %560 = vmatprep.subr.bf16.mxu1 %v672_v0 }
  0x55   :  { %538 = vmatpush3.bf16.msra.mxu0 %v537_v48 }
  0x56   :  { %562 = vmatpush3.bf16.msra.mxu1 %v561_v49  ;;  %563 = vmatprep.subr.bf16.mxu0 %v672_v0 }
  0x58   :  { %443 = vmatmul.mubr.f32.vlgmr.msra.gmra.mrb[0].mxu0 %v86_v52 }
  0x59   :  { %478 = vmatmul.mubr.f32.vlgmr.msra.gmra.mrb[0].mxu1 %v69_v54  ;;  %565 = vmatpush3.bf16.msra.mxu0 %v564_v53 }
  0x5a   :  { %566 = vmatprep.subr.bf16.mxu0 %v672_v0  ;;  %512 = vmatprep.mubr.msk.f32.mxu0 %vm673_vm0, %v674_v1  ;;  %v263_v1 = vld [vmem:[#allocation6 + $0x50] sm:$0xff] }
  0x5b   :  { %v579_v6 = vpack.c.bf16 %v264_v5, %v263_v1 }
  0x5d   :  { %568 = vmatpush3.bf16.msra.mxu0 %v567_v57 }
  0x5e   :  { %569 = vmatprep.subr.bf16.mxu0 %v672_v0 }
  0x61   :  { %571 = vmatpush3.bf16.msra.mxu0 %v570_v60 }
  0x62   :  { %572 = vmatprep.subr.bf16.mxu0 %v672_v0 }
  0x65   :  { %574 = vmatpush3.bf16.msra.mxu0 %v573_v63 }
  0x66   :  { %575 = vmatprep.subr.bf16.mxu0 %v672_v0 }
  0x69   :  { %577 = vmatpush3.bf16.msra.mxu0 %v576_v4 }
  0x6a   :  { %578 = vmatprep.subr.bf16.mxu0 %v672_v0 }
  0x6d   :  { %580 = vmatpush3.bf16.msra.mxu0 %v579_v6 }
  0x6e   :  { %581 = vmatprep.subr.bf16.mxu0 %v672_v0 }
  0x71   :  { %583 = vmatpush3.bf16.msra.mxu0 %v582_v9 }
  0x72   :  { %584 = vmatprep.subr.bf16.mxu0 %v672_v0  ;;  %v358_v0 = vld [vmem:[%s826_s6] ss:$0 sm:$0xff] }
  0x75   :  { %586 = vmatpush3.bf16.msra.mxu0 %v585_v12 }
 0x12b   :  { %v169_v13 = vpop.f32.mrb[0].mxu0 }
 0x12c   :  { %v239_v14 = vpop.f32.mrb[0].mxu1  ;;  %v444_v16 = vpop.f32.mrb[1].mxu0 }
 0x12d   :  { %v240_v17 = vadd.f32 %v239_v14, %v169_v13  ;;  %v479_v18 = vpop.f32.mrb[1].mxu1 }
 0x12f   :  { %v250_v19 = vadd.f32 %v357_v15, %v240_v17 }
 0x131   :  { %595 = vtanh.f32 %v250_v19 }
 0x13b   :  { %v596_v20 = vpop.eup %595 }
 0x13c   :  { %252 = vst [vmem:[%s827_s7] sm:$0xff] %v596_v20  ;;  %513 = vmatmul.mubr.f32.vlgmr.msra.gmra.mrb[2].mxu0 %v596_v20 }
 0x20f   :  { %v342_v21 = vpop.f32.mrb[2].mxu0 }
 0x210   :  { %v343_v22 = vadd.f32 %v358_v0, %v342_v21  ;;  %v514_v23 = vpop.f32.mrb[3].mxu0 }
 0x212   :  { %346 = vst [vmem:[%s828_s8] sm:$0xff] %v343_v22 }
 0x213   :  { %355 = vsyncpa [#allocation3], 1 }
 0x214   :  { %356 = vsyncpa [#allocation5], 1 }

// kernel: _rnn_cell_forward.1
= control target key start
LH: loop header
LB: loop body
LE: loop exit
PB: predicated region body
PF: predicated region fallthrough
CT: control target
= control target key end

     0   :  { %14 = vsyncpa [#allocation3], 0  ;;  %s820_s0 = inlined_call_operand.vmem [shape: f32[8,128], index: 0, kind: input, shape index: {}]   ;;  %s821_s1 = inlined_call_operand.vmem [shape: f32[8,128], index: 1, kind: input, shape index: {}]   ;;  %s822_s2 = inlined_call_operand.hbm [shape: f32[128,128], index: 2, kind: input, shape index: {}]   ;;  %s823_s3 = inlined_call_operand.hbm [shape: f32[128,128], index: 3, kind: input, shape index: {}]   ;;  %s824_s4 = inlined_call_operand.vmem [shape: f32[1,128], index: 4, kind: input, shape index: {}]   ;;  %s825_s5 = inlined_call_operand.hbm [shape: f32[128,128], index: 5, kind: input, shape index: {}]   ;;  %s826_s6 = inlined_call_operand.vmem [shape: f32[1,128], index: 6, kind: input, shape index: {}]   ;;  %s827_s7 = inlined_call_operand.vmem [shape: f32[8,128], index: 7, kind: output, shape index: {0}]   ;;  %s828_s8 = inlined_call_operand.vmem [shape: f32[8,128], index: 8, kind: output, shape index: {1}]  }
   0x1   :  { %15 = vsyncpa [#allocation5], 0  ;;  %s667_s27 = smov [#allocation4]   ;;  %s668_s29 = smov [#allocation2]  }
   0x2   :  { %s37_s28 = sshll.u32 %s667_s27, 4  ;;  %s25_s30 = sshll.u32 %s668_s29, 4  ;;  %s38_s28 = int_to_ptr.vmem [resolvable:$true] %s37_s28  ;;  %s720_s30 = int_to_ptr.vmem [resolvable:$true] %s25_s30 }
   0x3   :  { %s597_s11 = scalar_lea.hbm %s823_s3, 2048 }
   0x4   :  { %p598_p0 = scmp.ne.s32.totalorder %s823_s3, %s597_s11  ;;  %p601_p1 = scmp.lt.u32.totalorder %s597_s11, %s823_s3 }
   0x6   :  { %p603_p2 = pnand %p601_p1, %p598_p0 }
   0x8   :  { %606 = shalt.err (!%p603_p2)
}
   0x9   :  { %s607_s16 = scalar_lea.vmem %s38_s28, 2048  ;;  %p612_p4 = scmp.lt.s32.totalorder %s38_s28, %s38_s28 }
   0xa   :  { %p608_p3 = scmp.ne.s32.totalorder %s38_s28, %s607_s16  ;;  %p613_p5 = scmp.lt.s32.totalorder %s607_s16, %s607_s16 }
   0xc   :  { %p614_p6 = por %p613_p5, %p612_p4 }
   0xe   :  { %p615_p7 = pnand %p614_p6, %p608_p3 }
  0x10   :  { %618 = shalt.err (!%p615_p7)
}
  0x11   :  { %s669_s17 = smov 128   ;;  %s670_s18 = smov 8  }
  0x12   :  { %43 = dma.hbm_to_vmem [thread:$0]  %s823_s3, 2048, %s38_s28, [#allocation5], %s669_s17, %s669_s17, %s670_s18  }
  0x13   :  { %s619_s23 = scalar_lea.hbm %s822_s2, 2048 }
  0x14   :  { %p620_p8 = scmp.ne.s32.totalorder %s822_s2, %s619_s23  ;;  %p623_p9 = scmp.lt.u32.totalorder %s619_s23, %s822_s2 }
  0x16   :  { %p625_p10 = pnand %p623_p9, %p620_p8 }
  0x18   :  { %628 = shalt.err (!%p625_p10)
}
  0x19   :  { %s629_s29 = scalar_lea.vmem %s720_s30, 2048  ;;  %p634_p12 = scmp.lt.s32.totalorder %s720_s30, %s720_s30 }
  0x1a   :  { %p630_p11 = scmp.ne.s32.totalorder %s720_s30, %s629_s29  ;;  %p635_p13 = scmp.lt.s32.totalorder %s629_s29, %s629_s29 }
  0x1c   :  { %p636_p0 = por %p635_p13, %p634_p12 }
  0x1e   :  { %p637_p1 = pnand %p636_p0, %p630_p11 }
  0x20   :  { %640 = shalt.err (!%p637_p1)
}
  0x21   :  { %31 = dma.hbm_to_vmem [thread:$0]  %s822_s2, 2048, %s720_s30, [#allocation3], %s669_s17, %s669_s17, %s670_s18  }
  0x22   :  { %s671_s9 = smov [#allocation6]   ;;  %s641_s13 = scalar_lea.hbm %s825_s5, 2048 }
  0x23   :  { %s51_s10 = sshll.u32 %s671_s9, 4  ;;  %p642_p2 = scmp.ne.s32.totalorder %s825_s5, %s641_s13  ;;  %s52_s10 = int_to_ptr.vmem [resolvable:$true] %s51_s10 }
  0x24   :  { %p645_p3 = scmp.lt.u32.totalorder %s641_s13, %s825_s5 }
  0x26   :  { %p647_p4 = pnand %p645_p3, %p642_p2 }
  0x28   :  { %650 = shalt.err (!%p647_p4)
}
  0x29   :  { %s651_s20 = scalar_lea.vmem %s52_s10, 2048  ;;  %p656_p6 = scmp.lt.s32.totalorder %s52_s10, %s52_s10 }
  0x2a   :  { %p652_p5 = scmp.ne.s32.totalorder %s52_s10, %s651_s20  ;;  %p657_p7 = scmp.lt.s32.totalorder %s651_s20, %s651_s20 }
  0x2c   :  { %p658_p8 = por %p657_p7, %p656_p6 }
  0x2e   :  { %p659_p9 = pnand %p658_p8, %p652_p5 }
  0x30   :  { %662 = shalt.err (!%p659_p9)
}
  0x31   :  { %57 = dma.hbm_to_vmem [thread:$0]  %s825_s5, 2048, %s52_s10, [#allocation5], %s669_s17, %s669_s17, %s670_s18  }
  0x32   :  { %663 = dma.done.wait [#allocation3], 2048  }
  0x33   :  { %664 = vsyncadd [#allocation3], 4294965248 }
  0x34   :  { %665 = dma.done.wait [#allocation5], 4096  }
  0x35   :  { %666 = vsyncadd [#allocation5], 4294963200  ;;  %v672_v0 = vmov 0.0|0.0   ;;  %vm673_vm0 = vmmov 0   ;;  %v674_v1 = vmov 0.0   ;;  %v87_v2 = vld [vmem:[#allocation4] sm:$0xff] }
  0x36   :  { %515 = vmatprep.subr.bf16.mxu0 %v672_v0  ;;  %539 = vmatprep.subr.bf16.mxu1 %v672_v0  ;;  %v88_v3 = vld [vmem:[#allocation4 + $0x8] sm:$0xff]  ;;  %v70_v4 = vld [vmem:[#allocation2] sm:$0xff]  ;;  %v89_v7 = vld [vmem:[#allocation4 + $0x10] sm:$0xff] }
  0x37   :  { %442 = vmatprep.mubr.msk.f32.mxu0 %vm673_vm0, %v674_v1  ;;  %477 = vmatprep.mubr.msk.f32.mxu1 %vm673_vm0, %v674_v1  ;;  %v516_v5 = vpack.c.bf16 %v88_v3, %v87_v2  ;;  %v71_v6 = vld [vmem:[#allocation2 + $0x8] sm:$0xff]  ;;  %v90_v8 = vld [vmem:[#allocation4 + $0x18] sm:$0xff]  ;;  %v72_v10 = vld [vmem:[#allocation2 + $0x10] sm:$0xff] }
  0x38   :  { %v540_v9 = vpack.c.bf16 %v71_v6, %v70_v4  ;;  %v73_v11 = vld [vmem:[#allocation2 + $0x18] sm:$0xff]  ;;  %v519_v12 = vpack.c.bf16 %v90_v8, %v89_v7  ;;  %v91_v14 = vld [vmem:[#allocation4 + $0x20] sm:$0xff]  ;;  %v92_v15 = vld [vmem:[#allocation4 + $0x28] sm:$0xff] }
  0x39   :  { %517 = vmatpush3.bf16.msra.mxu0 %v516_v5  ;;  %v543_v13 = vpack.c.bf16 %v73_v11, %v72_v10  ;;  %v74_v16 = vld [vmem:[#allocation2 + $0x20] sm:$0xff]  ;;  %v75_v17 = vld [vmem:[#allocation2 + $0x28] sm:$0xff]  ;;  %v522_v18 = vpack.c.bf16 %v92_v15, %v91_v14  ;;  %v93_v20 = vld [vmem:[#allocation4 + $0x30] sm:$0xff] }
  0x3a   :  { %541 = vmatpush3.bf16.msra.mxu1 %v540_v9  ;;  %518 = vmatprep.subr.bf16.mxu0 %v672_v0  ;;  %v546_v19 = vpack.c.bf16 %v75_v17, %v74_v16  ;;  %v94_v21 = vld [vmem:[#allocation4 + $0x38] sm:$0xff]  ;;  %v76_v22 = vld [vmem:[#allocation2 + $0x30] sm:$0xff]  ;;  %v95_v26 = vld [vmem:[#allocation4 + $0x40] sm:$0xff] }
  0x3b   :  { %542 = vmatprep.subr.bf16.mxu1 %v672_v0  ;;  %v77_v23 = vld [vmem:[#allocation2 + $0x38] sm:$0xff]  ;;  %v525_v24 = vpack.c.bf16 %v94_v21, %v93_v20  ;;  %v96_v27 = vld [vmem:[#allocation4 + $0x48] sm:$0xff]  ;;  %v78_v28 = vld [vmem:[#allocation2 + $0x40] sm:$0xff] }
  0x3c   :  { %v549_v25 = vpack.c.bf16 %v77_v23, %v76_v22  ;;  %v79_v29 = vld [vmem:[#allocation2 + $0x48] sm:$0xff]  ;;  %v528_v30 = vpack.c.bf16 %v96_v27, %v95_v26  ;;  %v97_v32 = vld [vmem:[#allocation4 + $0x50] sm:$0xff]  ;;  %v98_v33 = vld [vmem:[#allocation4 + $0x58] sm:$0xff] }
  0x3d   :  { %520 = vmatpush3.bf16.msra.mxu0 %v519_v12  ;;  %v552_v31 = vpack.c.bf16 %v79_v29, %v78_v28  ;;  %v80_v34 = vld [vmem:[#allocation2 + $0x50] sm:$0xff]  ;;  %v81_v35 = vld [vmem:[#allocation2 + $0x58] sm:$0xff]  ;;  %v531_v36 = vpack.c.bf16 %v98_v33, %v97_v32  ;;  %v99_v38 = vld [vmem:[#allocation4 + $0x60] sm:$0xff] }
  0x3e   :  { %544 = vmatpush3.bf16.msra.mxu1 %v543_v13  ;;  %521 = vmatprep.subr.bf16.mxu0 %v672_v0  ;;  %v555_v37 = vpack.c.bf16 %v81_v35, %v80_v34  ;;  %v100_v39 = vld [vmem:[#allocation4 + $0x68] sm:$0xff]  ;;  %v82_v40 = vld [vmem:[#allocation2 + $0x60] sm:$0xff]  ;;  %v101_v44 = vld [vmem:[#allocation4 + $0x70] sm:$0xff] }
  0x3f   :  { %545 = vmatprep.subr.bf16.mxu1 %v672_v0  ;;  %v83_v41 = vld [vmem:[#allocation2 + $0x68] sm:$0xff]  ;;  %v534_v42 = vpack.c.bf16 %v100_v39, %v99_v38  ;;  %v102_v45 = vld [vmem:[#allocation4 + $0x78] sm:$0xff]  ;;  %v84_v46 = vld [vmem:[#allocation2 + $0x70] sm:$0xff] }
  0x40   :  { %v558_v43 = vpack.c.bf16 %v83_v41, %v82_v40  ;;  %v85_v47 = vld [vmem:[#allocation2 + $0x78] sm:$0xff]  ;;  %v537_v48 = vpack.c.bf16 %v102_v45, %v101_v44  ;;  %v253_v50 = vld [vmem:[#allocation6] sm:$0xff]  ;;  %v254_v51 = vld [vmem:[#allocation6 + $0x8] sm:$0xff] }
  0x41   :  { %523 = vmatpush3.bf16.msra.mxu0 %v522_v18  ;;  %v561_v49 = vpack.c.bf16 %v85_v47, %v84_v46  ;;  %v86_v52 = vld [vmem:[%s821_s1] sm:$0xff]  ;;  %v564_v53 = vpack.c.bf16 %v254_v51, %v253_v50  ;;  %v255_v55 = vld [vmem:[#allocation6 + $0x10] sm:$0xff]  ;;  %v256_v56 = vld [vmem:[#allocation6 + $0x18] sm:$0xff] }
  0x42   :  { %547 = vmatpush3.bf16.msra.mxu1 %v546_v19  ;;  %524 = vmatprep.subr.bf16.mxu0 %v672_v0  ;;  %v69_v54 = vld [vmem:[%s820_s0] sm:$0xff]  ;;  %v567_v57 = vpack.c.bf16 %v256_v56, %v255_v55  ;;  %v258_v59 = vld [vmem:[#allocation6 + $0x28] sm:$0xff]  ;;  %v259_v61 = vld [vmem:[#allocation6 + $0x30] sm:$0xff] }
  0x43   :  { %548 = vmatprep.subr.bf16.mxu1 %v672_v0  ;;  %v257_v58 = vld [vmem:[#allocation6 + $0x20] sm:$0xff]  ;;  %v260_v62 = vld [vmem:[#allocation6 + $0x38] sm:$0xff]  ;;  %v262_v3 = vld [vmem:[#allocation6 + $0x48] sm:$0xff] }
  0x44   :  { %v570_v60 = vpack.c.bf16 %v258_v59, %v257_v58  ;;  %v573_v63 = vpack.c.bf16 %v260_v62, %v259_v61  ;;  %v261_v2 = vld [vmem:[#allocation6 + $0x40] sm:$0xff]  ;;  %v264_v5 = vld [vmem:[#allocation6 + $0x58] sm:$0xff]  ;;  %v266_v8 = vld [vmem:[#allocation6 + $0x68] sm:$0xff] }
  0x45   :  { %526 = vmatpush3.bf16.msra.mxu0 %v525_v24  ;;  %v576_v4 = vpack.c.bf16 %v262_v3, %v261_v2  ;;  %v265_v7 = vld [vmem:[#allocation6 + $0x60] sm:$0xff]  ;;  %v267_v10 = vld [vmem:[#allocation6 + $0x70] sm:$0xff]  ;;  %v268_v11 = vld [vmem:[#allocation6 + $0x78] sm:$0xff] }
  0x46   :  { %550 = vmatpush3.bf16.msra.mxu1 %v549_v25  ;;  %527 = vmatprep.subr.bf16.mxu0 %v672_v0  ;;  %v582_v9 = vpack.c.bf16 %v266_v8, %v265_v7  ;;  %v585_v12 = vpack.c.bf16 %v268_v11, %v267_v10  ;;  %v357_v15 = vld [vmem:[%s824_s4] ss:$0 sm:$0xff] }
  0x47   :  { %551 = vmatprep.subr.bf16.mxu1 %v672_v0 }
  0x49   :  { %529 = vmatpush3.bf16.msra.mxu0 %v528_v30 }
  0x4a   :  { %553 = vmatpush3.bf16.msra.mxu1 %v552_v31  ;;  %530 = vmatprep.subr.bf16.mxu0 %v672_v0 }
  0x4b   :  { %554 = vmatprep.subr.bf16.mxu1 %v672_v0 }
  0x4d   :  { %532 = vmatpush3.bf16.msra.mxu0 %v531_v36 }
  0x4e   :  { %556 = vmatpush3.bf16.msra.mxu1 %v555_v37  ;;  %533 = vmatprep.subr.bf16.mxu0 %v672_v0 }
  0x4f   :  { %557 = vmatprep.subr.bf16.mxu1 %v672_v0 }
  0x51   :  { %535 = vmatpush3.bf16.msra.mxu0 %v534_v42 }
  0x52   :  { %559 = vmatpush3.bf16.msra.mxu1 %v558_v43  ;;  %536 = vmatprep.subr.bf16.mxu0 %v672_v0 }
  0x53   :  { %560 = vmatprep.subr.bf16.mxu1 %v672_v0 }
  0x55   :  { %538 = vmatpush3.bf16.msra.mxu0 %v537_v48 }
  0x56   :  { %562 = vmatpush3.bf16.msra.mxu1 %v561_v49  ;;  %563 = vmatprep.subr.bf16.mxu0 %v672_v0 }
  0x58   :  { %443 = vmatmul.mubr.f32.vlgmr.msra.gmra.mrb[0].mxu0 %v86_v52 }
  0x59   :  { %478 = vmatmul.mubr.f32.vlgmr.msra.gmra.mrb[0].mxu1 %v69_v54  ;;  %565 = vmatpush3.bf16.msra.mxu0 %v564_v53 }
  0x5a   :  { %566 = vmatprep.subr.bf16.mxu0 %v672_v0  ;;  %512 = vmatprep.mubr.msk.f32.mxu0 %vm673_vm0, %v674_v1  ;;  %v263_v1 = vld [vmem:[#allocation6 + $0x50] sm:$0xff] }
  0x5b   :  { %v579_v6 = vpack.c.bf16 %v264_v5, %v263_v1 }
  0x5d   :  { %568 = vmatpush3.bf16.msra.mxu0 %v567_v57 }
  0x5e   :  { %569 = vmatprep.subr.bf16.mxu0 %v672_v0 }
  0x61   :  { %571 = vmatpush3.bf16.msra.mxu0 %v570_v60 }
  0x62   :  { %572 = vmatprep.subr.bf16.mxu0 %v672_v0 }
  0x65   :  { %574 = vmatpush3.bf16.msra.mxu0 %v573_v63 }
  0x66   :  { %575 = vmatprep.subr.bf16.mxu0 %v672_v0 }
  0x69   :  { %577 = vmatpush3.bf16.msra.mxu0 %v576_v4 }
  0x6a   :  { %578 = vmatprep.subr.bf16.mxu0 %v672_v0 }
  0x6d   :  { %580 = vmatpush3.bf16.msra.mxu0 %v579_v6 }
  0x6e   :  { %581 = vmatprep.subr.bf16.mxu0 %v672_v0 }
  0x71   :  { %583 = vmatpush3.bf16.msra.mxu0 %v582_v9 }
  0x72   :  { %584 = vmatprep.subr.bf16.mxu0 %v672_v0  ;;  %v358_v0 = vld [vmem:[%s826_s6] ss:$0 sm:$0xff] }
  0x75   :  { %586 = vmatpush3.bf16.msra.mxu0 %v585_v12 }
 0x12b   :  { %v169_v13 = vpop.f32.mrb[0].mxu0 }
 0x12c   :  { %v239_v14 = vpop.f32.mrb[0].mxu1  ;;  %v444_v16 = vpop.f32.mrb[1].mxu0 }
 0x12d   :  { %v240_v17 = vadd.f32 %v239_v14, %v169_v13  ;;  %v479_v18 = vpop.f32.mrb[1].mxu1 }
 0x12f   :  { %v250_v19 = vadd.f32 %v357_v15, %v240_v17 }
 0x131   :  { %595 = vtanh.f32 %v250_v19 }
 0x13b   :  { %v596_v20 = vpop.eup %595 }
 0x13c   :  { %252 = vst [vmem:[%s827_s7] sm:$0xff] %v596_v20  ;;  %513 = vmatmul.mubr.f32.vlgmr.msra.gmra.mrb[2].mxu0 %v596_v20 }
 0x20f   :  { %v342_v21 = vpop.f32.mrb[2].mxu0 }
 0x210   :  { %v343_v22 = vadd.f32 %v358_v0, %v342_v21  ;;  %v514_v23 = vpop.f32.mrb[3].mxu0 }
 0x212   :  { %346 = vst [vmem:[%s828_s8] sm:$0xff] %v343_v22 }
 0x213   :  { %355 = vsyncpa [#allocation3], 1 }
 0x214   :  { %356 = vsyncpa [#allocation5], 1 }

</bundles_post_ra>
